<compile_context>
chip_gen: v5e
topology: v5e:2x2
jax: 0.10.0
libtpu: 0.0.40
codegen_flags: <defaults>
</compile_context>

<pallas_src>
import jax
import jax.numpy as jnp
from jax.experimental import pallas as pl
from jax.experimental.pallas import tpu as pltpu


def _round_up(n, m):
    return (n + m - 1) // m * m


def _simplenet_kernel(x_ref, w1_ref, w2_ref, w3_ref, w4_ref,
                      b1_ref, b2_ref, b3_ref, b4_ref, o_ref):
    """One batch tile; activations are [hidden, tile_b] (batch on lanes)."""
    xt = x_ref[...].astype(jnp.float32)          # [in_dim, tile_b]

    # fc1: K = in_dim (=2) matmul on the MXU; only bias-add + ReLU on the VPU.
    h = jnp.dot(w1_ref[...], xt, preferred_element_type=jnp.float32) + b1_ref[...]
    h = jnp.maximum(h, 0.0)                      # dropout == identity (eval mode)

    # fc2 / fc3: [H,H] x [H,tile_b] on the MXU with f32 accumulation.
    h = jnp.maximum(
        jnp.dot(w2_ref[...], h, preferred_element_type=jnp.float32) + b2_ref[...], 0.0)
    h = jnp.maximum(
        jnp.dot(w3_ref[...], h, preferred_element_type=jnp.float32) + b3_ref[...], 0.0)

    # fc4 (N = 1): lane-broadcast multiply + sublane reduce (XLU) + sigmoid (EUP).
    # Kept off the MXU: cheap, lane-dense [1, tile_b] result, exact f32.
    z = jnp.sum(h * w4_ref[...], axis=0, keepdims=True) + b4_ref[...]
    o_ref[...] = jax.nn.sigmoid(z).astype(o_ref.dtype)


def simplenet_forward_feature_major(xt, params, *, tile_b=2048):
    """Forward pass on feature-major input.

    xt:     [in_dim, B] float32 (or bf16 — upcast in-kernel), batch on lanes.
    params: torch-layout (w: [out, in], b: [out]).
    Returns [B, 1] float32 sigmoid activations.
    """
    w1, b1 = params["fc1"]
    w2, b2 = params["fc2"]
    w3, b3 = params["fc3"]
    w4, b4 = params["fc4"]

    in_dim, B = xt.shape
    H = w1.shape[0]
    out_dim = w4.shape[0]
    assert out_dim == 1, "SimpleNet emits a single sigmoid-activated output"
    assert w1.shape == (H, in_dim)
    assert w2.shape == (H, H) and w3.shape == (H, H) and w4.shape == (1, H)

    # Batch tile: multiple of 128 lanes; default 2048 (sweep 2048-8192).
    # Clamp so the grid keeps >= 2 roughly balanced steps when B allows it
    # (v7x megacore sharding via the "parallel" axis).
    tile_b = _round_up(max(128, min(tile_b, B)), 128)
    if B > 128:
        tile_b = min(tile_b, _round_up(pl.cdiv(B, 2), 128))
    num_tiles = pl.cdiv(B, tile_b)   # ragged last tile: OOB lanes masked/ignored

    # Tiny per-call weight prep (O(H) floats); fuses into the surrounding jit.
    w4col = w4.T                       # [H, 1]
    b1c = b1.reshape(H, 1)
    b2c = b2.reshape(H, 1)
    b3c = b3.reshape(H, 1)
    b4c = b4.reshape(1, 1)

    out = pl.pallas_call(
        _simplenet_kernel,
        out_shape=jax.ShapeDtypeStruct((1, B), jnp.float32),
        grid=(num_tiles,),
        in_specs=[
            pl.BlockSpec((in_dim, tile_b), lambda i: (0, i)),   # x tile (pipelined)
            pl.BlockSpec((H, in_dim), lambda i: (0, 0)),        # fc1 weight (resident)
            pl.BlockSpec((H, H), lambda i: (0, 0)),             # fc2 weight (resident)
            pl.BlockSpec((H, H), lambda i: (0, 0)),             # fc3 weight (resident)
            pl.BlockSpec((H, 1), lambda i: (0, 0)),             # fc4 weight column
            pl.BlockSpec((H, 1), lambda i: (0, 0)),             # b1
            pl.BlockSpec((H, 1), lambda i: (0, 0)),             # b2
            pl.BlockSpec((H, 1), lambda i: (0, 0)),             # b3
            pl.BlockSpec((1, 1), lambda i: (0, 0)),             # b4
        ],
        out_specs=pl.BlockSpec((1, tile_b), lambda i: (0, i)),  # lane-dense output
        compiler_params=pltpu.CompilerParams(
            dimension_semantics=("parallel",),
            vmem_limit_bytes=32 * 1024 * 1024),
    )(xt, w1, w2, w3, w4col, b1c, b2c, b3c, b4c)

    # (1, B) -> (B, 1): pure reshape (same data order), no transpose pass.
    return out.reshape(B, out_dim)


def simplenet_forward(x, params, *, tile_b=2048):
    """Compatibility shim for batch-major [B, in_dim] input.

    Prefer producing feature-major [in_dim, B] activations upstream (or calling
    this under the same jit as the producer so XLA fuses the transpose) —
    otherwise the transpose is an extra HBM pass over x."""
    return simplenet_forward_feature_major(x.T, params, tile_b=tile_b)


def init_params(key, input_dim, hidden_dim, output_dim):
    """Torch-layout params (w: [out, in], b: [out]) with nn.Linear-style init."""
    dims = [(input_dim, hidden_dim), (hidden_dim, hidden_dim),
            (hidden_dim, hidden_dim), (hidden_dim, output_dim)]
    names = ["fc1", "fc2", "fc3", "fc4"]
    params = {}
    for name, (fan_in, fan_out) in zip(names, dims):
        key, kw, kb = jax.random.split(key, 3)
        bound = 1.0 / (fan_in ** 0.5)
        w = jax.random.uniform(kw, (fan_out, fan_in), jnp.float32, -bound, bound)
        b = jax.random.uniform(kb, (fan_out,), jnp.float32, -bound, bound)
        params[name] = (w, b)
    return params


def simplenet_reference(x, params):
    """Plain-JAX reference on batch-major x.  fc1-fc3 use the same
    default-precision matmul path as the kernel's MXU dots; fc4 is an exact
    elementwise multiply+sum, matching the kernel's VPU/XLU edge layer."""
    w1, b1 = params["fc1"]
    w2, b2 = params["fc2"]
    w3, b3 = params["fc3"]
    w4, b4 = params["fc4"]

    h = jnp.maximum(x @ w1.T + b1[None, :], 0.0)
    h = jnp.maximum(h @ w2.T + b2[None, :], 0.0)
    h = jnp.maximum(h @ w3.T + b3[None, :], 0.0)
    z = jnp.sum(h * w4[0][None, :], axis=-1, keepdims=True) + b4[None, :]
    return jax.nn.sigmoid(z)


if __name__ == "__main__":
    # Moon data: 2 input features, 1 sigmoid output, small hidden layer.
    input_dim, hidden_dim, output_dim = 2, 32, 1

    key = jax.random.PRNGKey(0)
    key, kx1, kx2 = jax.random.split(key, 3)
    params = init_params(key, input_dim, hidden_dim, output_dim)

    fwd = jax.jit(simplenet_forward_feature_major)

    # Small batch: single (ragged) 128-lane tile.
    xt_small = jax.random.normal(kx1, (input_dim, 8), dtype=jnp.float32)
    out_small = jax.block_until_ready(fwd(xt_small, params))
    ref_small = simplenet_reference(xt_small.T, params)
    assert out_small.shape == (8, output_dim)
    assert jnp.allclose(out_small, ref_small, atol=2e-4, rtol=2e-4)

    # Larger batch: 2 parallel grid steps + masked ragged tail (1000 = 512+488).
    xt_big = jax.random.normal(kx2, (input_dim, 1000), dtype=jnp.float32)
    out_big = jax.block_until_ready(fwd(xt_big, params))
    ref_big = simplenet_reference(xt_big.T, params)
    assert out_big.shape == (1000, output_dim)
    assert jnp.allclose(out_big, ref_big, atol=2e-4, rtol=2e-4)

    # Batch-major compatibility shim.
    out_bm = jax.block_until_ready(simplenet_forward(xt_small.T, params))
    assert out_bm.shape == (8, output_dim)
    assert jnp.allclose(out_bm, ref_small, atol=2e-4, rtol=2e-4)

    print("KERNEL_OK")
</pallas_src>

<mosaic_0001>
module attributes {stable_mosaic.version = 11 : i64} {
  func.func @_simplenet_kernel(%arg0: i32, %arg1: memref<2x128xf32, #tpu.memory_space<vmem>>, %arg2: memref<32x2xf32, #tpu.memory_space<vmem>>, %arg3: memref<32x32xf32, #tpu.memory_space<vmem>>, %arg4: memref<32x32xf32, #tpu.memory_space<vmem>>, %arg5: memref<32x1xf32, #tpu.memory_space<vmem>>, %arg6: memref<32x1xf32, #tpu.memory_space<vmem>>, %arg7: memref<32x1xf32, #tpu.memory_space<vmem>>, %arg8: memref<32x1xf32, #tpu.memory_space<vmem>>, %arg9: memref<1x1xf32, #tpu.memory_space<vmem>>, %arg10: memref<1x128xf32, #tpu.memory_space<vmem>>) attributes {dimension_semantics = [#tpu.dimension_semantics<parallel>], iteration_bounds = array<i64: 1>, scalar_prefetch = 0 : i64, scratch_operands = 0 : i64, tpu.core_type = #tpu.core_type<tc>, window_params = [{transform_indices = @transform_0, window_bounds = array<i64: 2, 128>}, {pipeline_mode = #tpu.pipeline_mode<synchronous>, transform_indices = @transform_1, window_bounds = array<i64: 32, 2>}, {pipeline_mode = #tpu.pipeline_mode<synchronous>, transform_indices = @transform_2, window_bounds = array<i64: 32, 32>}, {pipeline_mode = #tpu.pipeline_mode<synchronous>, transform_indices = @transform_3, window_bounds = array<i64: 32, 32>}, {pipeline_mode = #tpu.pipeline_mode<synchronous>, transform_indices = @transform_4, window_bounds = array<i64: 32, 1>}, {pipeline_mode = #tpu.pipeline_mode<synchronous>, transform_indices = @transform_5, window_bounds = array<i64: 32, 1>}, {pipeline_mode = #tpu.pipeline_mode<synchronous>, transform_indices = @transform_6, window_bounds = array<i64: 32, 1>}, {pipeline_mode = #tpu.pipeline_mode<synchronous>, transform_indices = @transform_7, window_bounds = array<i64: 32, 1>}, {pipeline_mode = #tpu.pipeline_mode<synchronous>, transform_indices = @transform_8, window_bounds = array<i64: 1, 1>}, {transform_indices = @transform_9, window_bounds = array<i64: 1, 128>}]} {
    %c0 = arith.constant 0 : index
    %c0_0 = arith.constant 0 : index
    %0 = vector.load %arg1[%c0, %c0_0] : memref<2x128xf32, #tpu.memory_space<vmem>>, vector<2x128xf32>
    %c0_1 = arith.constant 0 : index
    %c0_2 = arith.constant 0 : index
    %1 = vector.load %arg2[%c0_1, %c0_2] : memref<32x2xf32, #tpu.memory_space<vmem>>, vector<32x2xf32>
    %cst = arith.constant dense<0.000000e+00> : vector<32x128xf32>
    %2 = tpu.matmul %1, %0, %cst {dimension_numbers = #tpu.dot_dimension_numbers<[1], [0], [0], [1], [0, 0, 1, 1], [], []>} : vector<32x2xf32>, vector<2x128xf32>, vector<32x128xf32> -> vector<32x128xf32>
    %c0_3 = arith.constant 0 : index
    %c0_4 = arith.constant 0 : index
    %3 = vector.load %arg6[%c0_3, %c0_4] : memref<32x1xf32, #tpu.memory_space<vmem>>, vector<32x1xf32>
    %4 = vector.broadcast %3 : vector<32x1xf32> to vector<32x128xf32>
    %5 = arith.addf %2, %4 : vector<32x128xf32>
    %cst_5 = arith.constant 0.000000e+00 : f32
    %6 = vector.broadcast %cst_5 : f32 to vector<32x128xf32>
    %7 = arith.maximumf %5, %6 : vector<32x128xf32>
    %c0_6 = arith.constant 0 : index
    %c0_7 = arith.constant 0 : index
    %8 = vector.load %arg3[%c0_6, %c0_7] : memref<32x32xf32, #tpu.memory_space<vmem>>, vector<32x32xf32>
    %cst_8 = arith.constant dense<0.000000e+00> : vector<32x128xf32>
    %9 = tpu.matmul %8, %7, %cst_8 {dimension_numbers = #tpu.dot_dimension_numbers<[1], [0], [0], [1], [0, 0, 1, 1], [], []>} : vector<32x32xf32>, vector<32x128xf32>, vector<32x128xf32> -> vector<32x128xf32>
    %c0_9 = arith.constant 0 : index
    %c0_10 = arith.constant 0 : index
    %10 = vector.load %arg7[%c0_9, %c0_10] : memref<32x1xf32, #tpu.memory_space<vmem>>, vector<32x1xf32>
    %11 = vector.broadcast %10 : vector<32x1xf32> to vector<32x128xf32>
    %12 = arith.addf %9, %11 : vector<32x128xf32>
    %cst_11 = arith.constant 0.000000e+00 : f32
    %13 = vector.broadcast %cst_11 : f32 to vector<32x128xf32>
    %14 = arith.maximumf %12, %13 : vector<32x128xf32>
    %c0_12 = arith.constant 0 : index
    %c0_13 = arith.constant 0 : index
    %15 = vector.load %arg4[%c0_12, %c0_13] : memref<32x32xf32, #tpu.memory_space<vmem>>, vector<32x32xf32>
    %cst_14 = arith.constant dense<0.000000e+00> : vector<32x128xf32>
    %16 = tpu.matmul %15, %14, %cst_14 {dimension_numbers = #tpu.dot_dimension_numbers<[1], [0], [0], [1], [0, 0, 1, 1], [], []>} : vector<32x32xf32>, vector<32x128xf32>, vector<32x128xf32> -> vector<32x128xf32>
    %c0_15 = arith.constant 0 : index
    %c0_16 = arith.constant 0 : index
    %17 = vector.load %arg8[%c0_15, %c0_16] : memref<32x1xf32, #tpu.memory_space<vmem>>, vector<32x1xf32>
    %18 = vector.broadcast %17 : vector<32x1xf32> to vector<32x128xf32>
    %19 = arith.addf %16, %18 : vector<32x128xf32>
    %cst_17 = arith.constant 0.000000e+00 : f32
    %20 = vector.broadcast %cst_17 : f32 to vector<32x128xf32>
    %21 = arith.maximumf %19, %20 : vector<32x128xf32>
    %c0_18 = arith.constant 0 : index
    %c0_19 = arith.constant 0 : index
    %22 = vector.load %arg5[%c0_18, %c0_19] : memref<32x1xf32, #tpu.memory_space<vmem>>, vector<32x1xf32>
    %23 = vector.broadcast %22 : vector<32x1xf32> to vector<32x128xf32>
    %24 = arith.mulf %21, %23 : vector<32x128xf32>
    %cst_20 = arith.constant dense<0.000000e+00> : vector<128xf32>
    %25 = vector.multi_reduction <add>, %24, %cst_20 [0] : vector<32x128xf32> to vector<128xf32>
    %26 = vector.shape_cast %25 : vector<128xf32> to vector<1x128xf32>
    %c0_21 = arith.constant 0 : index
    %c0_22 = arith.constant 0 : index
    %27 = vector.load %arg9[%c0_21, %c0_22] : memref<1x1xf32, #tpu.memory_space<vmem>>, vector<1x1xf32>
    %28 = vector.broadcast %27 : vector<1x1xf32> to vector<1x128xf32>
    %29 = arith.addf %26, %28 : vector<1x128xf32>
    %30 = arith.negf %29 : vector<1x128xf32>
    %31 = math.exp %30 : vector<1x128xf32>
    %cst_23 = arith.constant 1.000000e+00 : f32
    %32 = vector.broadcast %cst_23 : f32 to vector<1x128xf32>
    %33 = arith.addf %32, %31 : vector<1x128xf32>
    %34 = arith.divf %32, %33 : vector<1x128xf32>
    %c0_24 = arith.constant 0 : index
    %c0_25 = arith.constant 0 : index
    %35 = vector.load %arg10[%c0_24, %c0_25] : memref<1x128xf32, #tpu.memory_space<vmem>>, vector<1x128xf32>
    tpu.vector_store %arg10[%c0_24, %c0_25], %34 {strides = array<i32>} : memref<1x128xf32, #tpu.memory_space<vmem>>, vector<1x128xf32>,
    return
  }
  func.func @transform_0(%arg0: i32) -> (i32, i32) {
    %c0_i32 = arith.constant 0 : i32
    %c0_i32_0 = arith.constant 0 : i32
    return %c0_i32, %arg0 : i32, i32
  }
  func.func @transform_1(%arg0: i32) -> (i32, i32) {
    %c0_i32 = arith.constant 0 : i32
    %c0_i32_0 = arith.constant 0 : i32
    %c0_i32_1 = arith.constant 0 : i32
    return %c0_i32, %c0_i32_0 : i32, i32
  }
  func.func @transform_2(%arg0: i32) -> (i32, i32) {
    %c0_i32 = arith.constant 0 : i32
    %c0_i32_0 = arith.constant 0 : i32
    %c0_i32_1 = arith.constant 0 : i32
    return %c0_i32, %c0_i32_0 : i32, i32
  }
  func.func @transform_3(%arg0: i32) -> (i32, i32) {
    %c0_i32 = arith.constant 0 : i32
    %c0_i32_0 = arith.constant 0 : i32
    %c0_i32_1 = arith.constant 0 : i32
    return %c0_i32, %c0_i32_0 : i32, i32
  }
  func.func @transform_4(%arg0: i32) -> (i32, i32) {
    %c0_i32 = arith.constant 0 : i32
    %c0_i32_0 = arith.constant 0 : i32
    %c0_i32_1 = arith.constant 0 : i32
    return %c0_i32, %c0_i32_0 : i32, i32
  }
  func.func @transform_5(%arg0: i32) -> (i32, i32) {
    %c0_i32 = arith.constant 0 : i32
    %c0_i32_0 = arith.constant 0 : i32
    %c0_i32_1 = arith.constant 0 : i32
    return %c0_i32, %c0_i32_0 : i32, i32
  }
  func.func @transform_6(%arg0: i32) -> (i32, i32) {
    %c0_i32 = arith.constant 0 : i32
    %c0_i32_0 = arith.constant 0 : i32
    %c0_i32_1 = arith.constant 0 : i32
    return %c0_i32, %c0_i32_0 : i32, i32
  }
  func.func @transform_7(%arg0: i32) -> (i32, i32) {
    %c0_i32 = arith.constant 0 : i32
    %c0_i32_0 = arith.constant 0 : i32
    %c0_i32_1 = arith.constant 0 : i32
    return %c0_i32, %c0_i32_0 : i32, i32
  }
  func.func @transform_8(%arg0: i32) -> (i32, i32) {
    %c0_i32 = arith.constant 0 : i32
    %c0_i32_0 = arith.constant 0 : i32
    %c0_i32_1 = arith.constant 0 : i32
    return %c0_i32, %c0_i32_0 : i32, i32
  }
  func.func @transform_9(%arg0: i32) -> (i32, i32) {
    %c0_i32 = arith.constant 0 : i32
    %c0_i32_0 = arith.constant 0 : i32
    return %c0_i32, %arg0 : i32, i32
  }
}

</mosaic_0001>

<bundles_post_ra>
// kernel: simplenet_forward_feature_major.1
= control target key start
LH: loop header
LB: loop body
LE: loop exit
PB: predicated region body
PF: predicated region fallthrough
CT: control target
= control target key end

     0   :  { %s556_s0 = inlined_call_operand.vmem [shape: f32[2,8], index: 0, kind: input, shape index: {}]   ;;  %s557_s1 = inlined_call_operand.vmem [shape: f32[32,2], index: 1, kind: input, shape index: {}]   ;;  %s558_s2 = inlined_call_operand.vmem [shape: f32[32,32], index: 2, kind: input, shape index: {}]   ;;  %s559_s3 = inlined_call_operand.vmem [shape: f32[32,32], index: 3, kind: input, shape index: {}]   ;;  %s560_s4 = inlined_call_operand.vmem [shape: f32[32,1], index: 4, kind: input, shape index: {}]   ;;  %s561_s5 = inlined_call_operand.vmem [shape: f32[32,1], index: 5, kind: input, shape index: {}]   ;;  %s562_s6 = inlined_call_operand.vmem [shape: f32[32,1], index: 6, kind: input, shape index: {}]   ;;  %s563_s7 = inlined_call_operand.vmem [shape: f32[32,1], index: 7, kind: input, shape index: {}]   ;;  %s564_s8 = inlined_call_operand.<no memory space> [shape: f32[1,1], index: 8, kind: input, shape index: {}]   ;;  %s565_s9 = inlined_call_operand.hbm [shape: f32[1,8], index: 9, kind: output, shape index: {}]  }
   0x1   :  { %v14_v0 = vstv %s564_s8 }
   0x2   :  { %15 = vst [vmem:[#allocation2] sm:$0x1] %v14_v0 }
   0x3   :  { %v35_v1 = vld [vmem:[%s556_s0] sm:$0x3]  ;;  %vm77_vm0 = vcmask 1041408   ;;  %v43_v2 = vld [vmem:[%s561_s5 + $0x18] sm:$0xff]  ;;  %v41_v3 = vld [vmem:[%s561_s5 + $0x8] sm:$0xff]  ;;  %v399_v4 = vmov 0  }
   0x4   :  { %367 = vset.pattern.permute.xlu1 %v399_v4  ;;  %366 = vset.pattern.permute.xlu0 %v399_v4  ;;  %v36_v5 = vld [vmem:[%s557_s1] sm:$0xff]  ;;  %vm64_vm1 = vcmask 15360  }
   0x5   :  { %342 = vmatpush.msk.msra.mxu0 %vm77_vm0, %v35_v1  ;;  %61 = vperm.xlu0 %366, %v43_v2  }
   0x6   :  { %51 = vperm.xlu1 %367, %v41_v3   ;;  %343 = vmatmul.msk.f32.vlgmr.msra.gmra.mxu0 %vm64_vm1, %v36_v5 }
   0x7   :  { %368 = vset.pattern.permute.xlu2 %v399_v4 }
   0x8   :  { %16 = vsyncpa [#allocation4], 0  ;;  %v42_v6 = vld [vmem:[%s561_s5 + $0x10] sm:$0xff]  ;;  %v40_v7 = vld [vmem:[%s561_s5] sm:$0xff]  ;;  %vm142_vm2 = vcmask 261120  }
   0x9   :  { %v37_v8 = vld [vmem:[%s557_s1 + $0x8] sm:$0xff]  ;;  %v118_v10 = vld [vmem:[%s562_s6] sm:$0xff]  ;;  %v38_v11 = vld [vmem:[%s557_s1 + $0x10] sm:$0xff] }
   0xa   :  { %v119_v9 = vld [vmem:[%s562_s6 + $0x8] sm:$0xff]  ;;  %v194_v13 = vld [vmem:[%s563_s7 + $0x10] sm:$0xff]  ;;  %v39_v14 = vld [vmem:[%s557_s1 + $0x18] sm:$0xff]  ;;  %s333_s1 = sshll.u32 %s565_s9, 4  ;;  %s334_s1 = int_to_ptr.hbm [resolvable:$true] %s333_s1 }
   0xb   :  { %v193_v12 = vld [vmem:[%s563_s7 + $0x8] sm:$0xff]  ;;  %v261_v15 = vld [vmem:[%s560_s4] sm:$0xff]  ;;  %v264_v17 = vld [vmem:[%s560_s4 + $0x18] sm:$0xff] }
   0xc   :  { %v262_v16 = vld [vmem:[%s560_s4 + $0x8] sm:$0xff]  ;;  %v298_v18 = vld [vmem:[#allocation2] sm:$0x1]  ;;  %v121_v24 = vld [vmem:[%s562_s6 + $0x18] sm:$0xff] }
   0xd   :  { %56 = vperm.xlu0 %366, %v42_v6   ;;  %139 = vperm.xlu2 %368, %v121_v24   ;;  %v120_v31 = vld [vmem:[%s562_s6 + $0x10] sm:$0xff]  ;;  %v114_v37 = vld [vmem:[%s558_s2] sm:$0xff]  ;;  %v115_v38 = vld [vmem:[%s558_s2 + $0x8] sm:$0xff] }
   0xe   :  { %46 = vperm.xlu1 %367, %v40_v7   ;;  %344 = vmatmul.msk.f32.gmra.mxu0 %vm64_vm1, %v37_v8  ;;  %v192_v39 = vld [vmem:[%s563_s7] sm:$0xff]  ;;  %v116_v40 = vld [vmem:[%s558_s2 + $0x10] sm:$0xff]  ;;  %v195_v41 = vld [vmem:[%s563_s7 + $0x18] sm:$0xff] }
   0xf   :  { %v117_v42 = vld [vmem:[%s558_s2 + $0x18] sm:$0xff]  ;;  %v263_v43 = vld [vmem:[%s560_s4 + $0x10] sm:$0xff]  ;;  %v188_v60 = vld [vmem:[%s559_s3] sm:$0xff] }
  0x10   :  { %v189_v61 = vld [vmem:[%s559_s3 + $0x8] sm:$0xff]  ;;  %v190_v62 = vld [vmem:[%s559_s3 + $0x10] sm:$0xff]  ;;  %v191_v63 = vld [vmem:[%s559_s3 + $0x18] sm:$0xff]  ;;  %s400_s3 = smov [#allocation3]  }
  0x11   :  { %s331_s16 = sshll.u32 %s400_s3, 4  ;;  %s332_s16 = int_to_ptr.vmem [resolvable:$true] %s331_s16 }
  0x15   :  { %129 = vperm.xlu0 %366, %v119_v9   ;;  %134 = vperm.xlu2 %368, %v120_v31  }
  0x16   :  { %124 = vperm.xlu1 %367, %v118_v10   ;;  %345 = vmatmul.msk.f32.gmra.mxu0 %vm64_vm1, %v38_v11 }
  0x1d   :  { %203 = vperm.xlu0 %366, %v193_v12   ;;  %198 = vperm.xlu2 %368, %v192_v39  }
  0x1e   :  { %208 = vperm.xlu1 %367, %v194_v13   ;;  %346 = vmatmul.msk.f32.gmra.mxu0 %vm64_vm1, %v39_v14 }
  0x25   :  { %267 = vperm.xlu0 %366, %v261_v15   ;;  %213 = vperm.xlu2 %368, %v195_v41  }
  0x26   :  { %272 = vperm.xlu1 %367, %v262_v16  }
  0x2d   :  { %282 = vperm.xlu0 %366, %v264_v17   ;;  %277 = vperm.xlu2 %368, %v263_v43  }
  0x2e   :  { %301 = vperm.xlu1 %367, %v298_v18  }
  0x67   :  { %v140_v45 = vpop.permute.xlu2 %139 }
  0x6f   :  { %v135_v47 = vpop.permute.xlu2 %134 }
  0x77   :  { %v62_v21 = vpop.permute.xlu0 %61  ;;  %v199_v0 = vpop.permute.xlu2 %198 }
  0x78   :  { %v52_v23 = vpop.permute.xlu1 %51 }
  0x7f   :  { %v57_v25 = vpop.permute.xlu0 %56  ;;  %v214_v4 = vpop.permute.xlu2 %213 }
  0x80   :  { %v47_v32 = vpop.permute.xlu1 %46 }
  0x83   :  { %v98_v19 = vpop.f32.mrf.mxu0 }
  0x84   :  { %v99_v33 = vadd.f32 %v98_v19, %v47_v32 }
  0x86   :  { %v110_v36 = vmax.f32 %v99_v33, 0.0 }
  0x87   :  { %v130_v51 = vpop.permute.xlu0 %129  ;;  %v278_v16 = vpop.permute.xlu2 %277 }
  0x88   :  { %v125_v55 = vpop.permute.xlu1 %124 }
  0x8b   :  { %v101_v20 = vpop.f32.mrf.mxu0 }
  0x8c   :  { %v102_v29 = vadd.f32 %v101_v20, %v52_v23 }
  0x8e   :  { %v111_v35 = vmax.f32 %v102_v29, 0.0 }
  0x8f   :  { %v204_v1 = vpop.permute.xlu0 %203 }
  0x90   :  { %v209_v3 = vpop.permute.xlu1 %208 }
  0x93   :  { %v104_v22 = vpop.f32.mrf.mxu0 }
  0x94   :  { %v105_v27 = vadd.f32 %v104_v22, %v57_v25 }
  0x96   :  { %v112_v34 = vmax.f32 %v105_v27, 0.0 }
  0x97   :  { %v268_v10 = vpop.permute.xlu0 %267 }
  0x98   :  { %v273_v14 = vpop.permute.xlu1 %272 }
  0x9b   :  { %v107_v26 = vpop.f32.mrf.mxu0 }
  0x9c   :  { %v108_v28 = vadd.f32 %v107_v26, %v62_v21 }
  0x9e   :  { %v113_v30 = vmax.f32 %v108_v28, 0.0 }
  0x9f   :  { %v283_v23 = vpop.permute.xlu0 %282 }
  0xa0   :  { %167 = vmatpush.msra.mxu1 %v113_v30  ;;  %356 = vmatpush.msra.mxu3 %v113_v30  ;;  %v302_v31 = vpop.permute.xlu1 %301 }
  0xa1   :  { %v304_v33 = vperm.slane %v302_v31, 0 }
  0xa2   :  { %168 = vmatpush.msra.mxu1 %v112_v34  ;;  %357 = vmatpush.msra.mxu3 %v112_v34 }
  0xa4   :  { %169 = vmatpush.msra.mxu1 %v111_v35  ;;  %358 = vmatpush.msra.mxu3 %v111_v35 }
  0xa6   :  { %170 = vmatpush.msra.mxu1 %v110_v36  ;;  %359 = vmatpush.msra.mxu3 %v110_v36 }
  0xa7   :  { %347 = vmatmul.msk.f32.vlgmr.msra.gmra.mxu1 %vm142_vm2, %v114_v37  ;;  %348 = vmatmul.msk.f32.vlgmr.msra.gmra.mxu3 %vm142_vm2, %v115_v38 }
  0xaf   :  { %349 = vmatmul.msk.f32.gmra.mxu3 %vm142_vm2, %v116_v40 }
  0xb7   :  { %350 = vmatmul.msk.f32.gmra.mxu3 %vm142_vm2, %v117_v42 }
 0x124   :  { %v172_v52 = vpop.f32.mrf.mxu1 }
 0x125   :  { %v173_v56 = vadd.f32 %v172_v52, %v125_v55 }
 0x127   :  { %v184_v59 = vmax.f32 %v173_v56, 0.0 }
 0x12a   :  { %v175_v44 = vpop.f32.mrf.mxu3 }
 0x12b   :  { %v176_v53 = vadd.f32 %v175_v44, %v130_v51 }
 0x12d   :  { %v185_v58 = vmax.f32 %v176_v53, 0.0 }
 0x132   :  { %v178_v46 = vpop.f32.mrf.mxu3 }
 0x133   :  { %v179_v49 = vadd.f32 %v178_v46, %v135_v47 }
 0x135   :  { %v186_v57 = vmax.f32 %v179_v49, 0.0 }
 0x13a   :  { %v181_v48 = vpop.f32.mrf.mxu3 }
 0x13b   :  { %v182_v50 = vadd.f32 %v181_v48, %v140_v45 }
 0x13d   :  { %v187_v54 = vmax.f32 %v182_v50, 0.0 }
 0x13f   :  { %240 = vmatpush.msrb.mxu1 %v187_v54  ;;  %360 = vmatpush.msra.mxu2 %v187_v54 }
 0x141   :  { %241 = vmatpush.msrb.mxu1 %v186_v57  ;;  %361 = vmatpush.msra.mxu2 %v186_v57 }
 0x143   :  { %242 = vmatpush.msrb.mxu1 %v185_v58  ;;  %362 = vmatpush.msra.mxu2 %v185_v58 }
 0x145   :  { %243 = vmatpush.msrb.mxu1 %v184_v59  ;;  %363 = vmatpush.msra.mxu2 %v184_v59 }
 0x146   :  { %351 = vmatmul.msk.f32.vlgmr.msrb.gmra.mxu1 %vm142_vm2, %v188_v60  ;;  %352 = vmatmul.msk.f32.vlgmr.msra.gmra.mxu2 %vm142_vm2, %v189_v61 }
 0x14e   :  { %353 = vmatmul.msk.f32.gmra.mxu2 %vm142_vm2, %v190_v62 }
 0x156   :  { %354 = vmatmul.msk.f32.gmra.mxu2 %vm142_vm2, %v191_v63 }
 0x1c3   :  { %v245_v5 = vpop.f32.mrf.mxu1 }
 0x1c4   :  { %v246_v8 = vadd.f32 %v245_v5, %v199_v0 }
 0x1c6   :  { %v257_v12 = vmax.f32 %v246_v8, 0.0 }
 0x1c8   :  { %v285_v18 = vmul.f32 %v268_v10, %v257_v12 }
 0x1c9   :  { %v248_v2 = vpop.f32.mrf.mxu2 }
 0x1ca   :  { %v249_v6 = vadd.f32 %v248_v2, %v204_v1 }
 0x1cc   :  { %v258_v11 = vmax.f32 %v249_v6, 0.0 }
 0x1ce   :  { %v286_v15 = vmul.f32 %v273_v14, %v258_v11 }
 0x1d0   :  { %v289_v21 = vadd.f32 %v286_v15, %v285_v18 }
 0x1d1   :  { %v251_v7 = vpop.f32.mrf.mxu2 }
 0x1d2   :  { %v252_v9 = vadd.f32 %v251_v7, %v209_v3 }
 0x1d4   :  { %v259_v13 = vmax.f32 %v252_v9, 0.0 }
 0x1d6   :  { %v287_v19 = vmul.f32 %v278_v16, %v259_v13 }
 0x1d8   :  { %v290_v24 = vadd.f32 %v289_v21, %v287_v19 }
 0x1d9   :  { %v254_v17 = vpop.f32.mrf.mxu2 }
 0x1da   :  { %v255_v20 = vadd.f32 %v254_v17, %v214_v4 }
 0x1dc   :  { %v260_v22 = vmax.f32 %v255_v20, 0.0 }
 0x1de   :  { %v288_v25 = vmul.f32 %v283_v23, %v260_v22 }
 0x1e0   :  { %v291_v26 = vadd.f32 %v290_v24, %v288_v25 }
 0x1e2   :  { %v292_v27 = vrot.slane %v291_v26, 4 }
 0x1e4   :  { %v293_v28 = vadd.f32 %v292_v27, %v291_v26 }
 0x1e6   :  { %v294_v29 = vrot.slane %v293_v28, 2 }
 0x1e8   :  { %v295_v30 = vadd.f32 %v294_v29, %v293_v28 }
 0x1ea   :  { %v296_v32 = vrot.slane %v295_v30, 1 }
 0x1ec   :  { %v297_v34 = vadd.f32 %v296_v32, %v295_v30 }
 0x1ee   :  { %v305_v35 = vadd.f32 %v304_v33, %v297_v34 }
 0x1f0   :  { %v355_v36 = vmul.f32 -1.442695, %v305_v35 }
 0x1f2   :  { %369 = vpow2.f32 %v355_v36 }
 0x1f8   :  { %v370_v37 = vpop.eup %369 }
 0x1f9   :  { %v309_v38 = vadd.f32 1.0, %v370_v37 }
 0x1fb   :  { %371 = vrcp.f32 %v309_v38  ;;  %v321_v42 = vand.u32 2147483648, %v309_v38  ;;  %v319_v44 = vand.u32 2147483647, %v309_v38  ;;  %vm315_vm4 = vweird.f32 %v309_v38 }
 0x1fd   :  { %v322_v46 = vor.u32 1.1754944e-38, %v321_v42  ;;  %vm320_vm6 = vcmp.eq.f32.partialorder %v319_v44, 8.507059e+37 }
 0x201   :  { %v372_v39 = vpop.eup %371 }
 0x202   :  { %v311_v40 = vmul.f32 %v372_v39, %v309_v38  ;;  %vm316_vm3 = vweird.f32 %v372_v39 }
 0x203   :  { %vm317_vm5 = vmor %vm315_vm4, %vm316_vm3 }
 0x204   :  { %v312_v41 = vsub.f32 1.0, %v311_v40 }
 0x206   :  { %v313_v43 = vmul.f32 %v372_v39, %v312_v41 }
 0x208   :  { %v314_v45 = vadd.f32 %v372_v39, %v313_v43 }
 0x20a   :  { %v318_v47 = vsel %vm317_vm5, %v372_v39, %v314_v45 }
 0x20b   :  { %v323_v48 = vsel %vm320_vm6, %v322_v46, %v318_v47 }
 0x20c   :  { %325 = vst [vmem:[#allocation3] sm:$0x1] %v323_v48 }
 0x20d   :  { %336 = dma.vmem_to_hbm [thread:$0]  %s332_s16, 16, %s334_s1, [#allocation4]  }
 0x20e   :  { %397 = dma.done.wait [#allocation4], 16  }
 0x20f   :  { %398 = vsyncadd [#allocation4], 4294967280 }
 0x210   :  { %341 = vsyncpa [#allocation4], 1 }

</bundles_post_ra>
